<compile_context>
chip_gen: v6e
topology: v6e:2x2x1
jax: 0.10.0
libtpu: 0.0.40
codegen_flags: <defaults>
</compile_context>

<pallas_src>
import jax
import jax.numpy as jnp
from jax import lax
from jax.experimental import pallas as pl
from jax.experimental.pallas import tpu as pltpu


def _make_adj_kernel(scale: float, matmul_dtype):
    def kernel(x_ref, wq_ref, wk_ref, o_ref):
        # x_ref: (1, N, D); wq_ref / wk_ref: (1, D, dh); o_ref: (1, 1, N, N)
        x = x_ref[0]                                   # (N, D)
        if matmul_dtype is not None:
            x = x.astype(matmul_dtype)                 # weights arrive pre-cast from host

        # Per-head q / k projection (tiny vs. the O(N^2) work), f32 accumulation.
        q = jnp.dot(x, wq_ref[0], preferred_element_type=jnp.float32)   # (N, dh)
        k = jnp.dot(x, wk_ref[0], preferred_element_type=jnp.float32)   # (N, dh)

        if scale != 1.0:
            q = q * scale                              # fold 1/Tem into q: N*dh muls, not N^2
        if matmul_dtype is not None:
            q = q.astype(matmul_dtype)                 # intentional re-round (documented)
            k = k.astype(matmul_dtype)

        # q @ k^T, contracting the last dims of both operands (no XLU transpose of k).
        dots = lax.dot_general(q, k, (((1,), (1,)), ((), ())),
                               preferred_element_type=jnp.float32)      # (N, N)

        # Row softmax.  Exact reciprocal of the (N,1) denominator (per review).
        m = jnp.max(dots, axis=-1, keepdims=True)
        e = jnp.exp(dots - m)
        s = jnp.sum(e, axis=-1, keepdims=True)
        attn = e * (1.0 / s)

        # BatchAdjNorm.  ReLU after softmax is a mathematical no-op -> dropped.
        #   A*(1-I) + (A*(1-I))^T + I  ==  where(i==j, 1, attn + attn^T)
        # Diagonal mask from (N,1) vs (1,N) iotas -- no full (N,N) int32 temporaries.
        n = o_ref.shape[-1]
        rid = lax.broadcasted_iota(jnp.int32, (n, 1), 0)
        cid = lax.broadcasted_iota(jnp.int32, (1, n), 1)
        a = jnp.where(rid == cid, 1.0, attn + attn.T)                   # (N, N), symmetric

        # D^{-1/2} A D^{-1/2}.  A is symmetric -> column degrees == row degrees, so
        # reuse the row reduction and transpose only the (N,1) factor.
        d_row = jnp.sum(a, axis=1, keepdims=True)                       # (N, 1)
        inv = lax.rsqrt(d_row + 1e-10)                                  # EUP rsqrt
        o_ref[0, 0] = (inv * a * inv.T).astype(o_ref.dtype)

    return kernel


def _default_vmem_limit_bytes():
    """Scoped-VMEM limit with headroom derived from the chip's actual capacity.

    Never requests the full physical VMEM (e.g. 64 MiB on a v7x TC) so Mosaic keeps
    room for internal scratch / double buffers.  Returns None (leave the default) if
    the hardware query is unavailable.
    """
    try:
        cap = int(pltpu.get_tpu_info().vmem_capacity_bytes)
        return min(int(cap * 0.75), 100 * 1024 * 1024)
    except Exception:
        return None


def adj_generator(x, w_qk, head: int, Tem: int = 1, matmul_dtype=None,
                  out_dtype=jnp.float32):
    """x: (B, N, D) f32; w_qk: (D, dim_head*head*head) pre-transposed Linear weight.

    Returns the normalized adjacency (B, head, N, N) in `out_dtype` (bf16 output is an
    option for HBM-writeback-bound chips like v5e/v6e).  `matmul_dtype=jnp.bfloat16`
    runs the MXU matmuls with bf16 operands / f32 accumulation; softmax and the degree
    normalization stay f32.
    """
    B, N, D = x.shape
    out_dim = w_qk.shape[1]
    dh = (out_dim // 2) // head            # per-head q/k width (== dim_head*head/2)
    scale = float(Tem) ** (-1)

    # One-time host-side weight re-layout: (D, 2*head*dh) -> per-head (head, D, dh)
    # q and k slabs, so the kernel never slices lane-unaligned columns.
    w_q, w_k = jnp.split(w_qk, 2, axis=1)                        # (D, head*dh) each
    wq_h = jnp.transpose(w_q.reshape(D, head, dh), (1, 0, 2))    # (head, D, dh)
    wk_h = jnp.transpose(w_k.reshape(D, head, dh), (1, 0, 2))
    if matmul_dtype is not None:
        wq_h = wq_h.astype(matmul_dtype)                         # cast once, not per step
        wk_h = wk_h.astype(matmul_dtype)

    cp_kwargs = dict(dimension_semantics=("parallel", "parallel"))
    vmem_limit = _default_vmem_limit_bytes()
    if vmem_limit is not None:
        cp_kwargs["vmem_limit_bytes"] = vmem_limit

    return pl.pallas_call(
        _make_adj_kernel(scale, matmul_dtype),
        out_shape=jax.ShapeDtypeStruct((B, head, N, N), out_dtype),
        grid_spec=pltpu.PrefetchScalarGridSpec(
            num_scalar_prefetch=0,
            grid=(B, head),
            in_specs=[
                pl.BlockSpec((1, N, D), lambda b, h: (b, 0, 0)),   # re-DMA only when b changes
                pl.BlockSpec((1, D, dh), lambda b, h: (h, 0, 0)),  # per-head q weight slab
                pl.BlockSpec((1, D, dh), lambda b, h: (h, 0, 0)),  # per-head k weight slab
            ],
            out_specs=pl.BlockSpec((1, 1, N, N), lambda b, h: (b, h, 0, 0)),
        ),
        compiler_params=pltpu.CompilerParams(**cp_kwargs),
    )(x, wq_h, wk_h)


def adj_generator_reference(x, w_qk, head: int, Tem: int = 1):
    """Pure-JAX reference mirroring the PyTorch forward semantics (f32)."""
    B, N, D = x.shape
    qk = x @ w_qk
    q, k = jnp.split(qk, 2, axis=-1)
    dh = q.shape[-1] // head
    q = q.reshape(B, N, head, dh).transpose(0, 2, 1, 3)
    k = k.reshape(B, N, head, dh).transpose(0, 2, 1, 3)
    dots = jnp.einsum("bhid,bhjd->bhij", q, k) * (float(Tem) ** (-1))
    attn = jax.nn.softmax(dots, axis=-1)
    a = jnp.maximum(attn, 0.0)
    eye = jnp.eye(N, dtype=jnp.float32)
    a = a * (1.0 - eye)
    a = a + jnp.swapaxes(a, 2, 3)
    a = a + eye
    d = jnp.sum(a, axis=3)
    dinv = 1.0 / jnp.sqrt(d + 1e-10)
    return dinv[..., :, None] * a * dinv[..., None, :]


if __name__ == "__main__":
    # Small shapes consistent with the module: dim=32, head=2, dim_head=4, Tem=1.
    B, N, dim, head, dim_head, Tem = 2, 8, 32, 2, 4, 1
    inner_dim = dim_head * head
    out_dim = inner_dim * head              # nn.Linear(dim, inner_dim * head, bias=False)

    key = jax.random.PRNGKey(0)
    kx, kw = jax.random.split(key)
    x = jax.random.normal(kx, (B, N, dim), dtype=jnp.float32)
    # PyTorch stores the Linear weight as (out, in); we keep the pre-transposed (in, out).
    w_qk = jax.random.normal(kw, (dim, out_dim), dtype=jnp.float32) * 0.1

    ref = adj_generator_reference(x, w_qk, head, Tem)

    # f32 matmul path (matches module semantics).
    out = jax.block_until_ready(adj_generator(x, w_qk, head, Tem))
    assert out.shape == (B, head, N, N)
    max_err = float(jnp.max(jnp.abs(out - ref)))
    assert max_err < 2e-3, f"f32 path mismatch vs reference: {max_err}"

    # Optional bf16-operand matmul path (f32 accumulation / softmax / normalization).
    out_bf = jax.block_until_ready(
        adj_generator(x, w_qk, head, Tem, matmul_dtype=jnp.bfloat16))
    max_err_bf = float(jnp.max(jnp.abs(out_bf - ref)))
    assert max_err_bf < 5e-2, f"bf16 path mismatch vs reference: {max_err_bf}"

    print("KERNEL_OK")
</pallas_src>

<mosaic_0001>
module attributes {stable_mosaic.version = 11 : i64} {
  func.func @kernel(%arg0: i32, %arg1: i32, %arg2: memref<1x8x32xf32, #tpu.memory_space<vmem>>, %arg3: memref<1x32x4xf32, #tpu.memory_space<vmem>>, %arg4: memref<1x32x4xf32, #tpu.memory_space<vmem>>, %arg5: memref<1x1x8x8xf32, #tpu.memory_space<vmem>>) attributes {dimension_semantics = [#tpu.dimension_semantics<parallel>, #tpu.dimension_semantics<parallel>], iteration_bounds = array<i64: 2, 2>, scalar_prefetch = 0 : i64, scratch_operands = 0 : i64, tpu.core_type = #tpu.core_type<tc>, window_params = [{transform_indices = @transform_0, window_bounds = array<i64: 1, 8, 32>}, {transform_indices = @transform_1, window_bounds = array<i64: 1, 32, 4>}, {transform_indices = @transform_2, window_bounds = array<i64: 1, 32, 4>}, {transform_indices = @transform_3, window_bounds = array<i64: 1, 1, 8, 8>}]} {
    %c0 = arith.constant 0 : index
    %c0_0 = arith.constant 0 : index
    %c0_1 = arith.constant 0 : index
    %0 = vector.load %arg2[%c0, %c0_0, %c0_1] : memref<1x8x32xf32, #tpu.memory_space<vmem>>, vector<1x8x32xf32>
    %1 = vector.shape_cast %0 : vector<1x8x32xf32> to vector<8x32xf32>
    %c0_2 = arith.constant 0 : index
    %c0_3 = arith.constant 0 : index
    %c0_4 = arith.constant 0 : index
    %2 = vector.load %arg3[%c0_2, %c0_3, %c0_4] : memref<1x32x4xf32, #tpu.memory_space<vmem>>, vector<1x32x4xf32>
    %3 = vector.shape_cast %2 : vector<1x32x4xf32> to vector<32x4xf32>
    %cst = arith.constant dense<0.000000e+00> : vector<8x4xf32>
    %4 = tpu.matmul %1, %3, %cst {dimension_numbers = #tpu.dot_dimension_numbers<[1], [0], [0], [1], [0, 0, 1, 1], [], []>} : vector<8x32xf32>, vector<32x4xf32>, vector<8x4xf32> -> vector<8x4xf32>
    %c0_5 = arith.constant 0 : index
    %c0_6 = arith.constant 0 : index
    %c0_7 = arith.constant 0 : index
    %5 = vector.load %arg4[%c0_5, %c0_6, %c0_7] : memref<1x32x4xf32, #tpu.memory_space<vmem>>, vector<1x32x4xf32>
    %6 = vector.shape_cast %5 : vector<1x32x4xf32> to vector<32x4xf32>
    %cst_8 = arith.constant dense<0.000000e+00> : vector<8x4xf32>
    %7 = tpu.matmul %1, %6, %cst_8 {dimension_numbers = #tpu.dot_dimension_numbers<[1], [0], [0], [1], [0, 0, 1, 1], [], []>} : vector<8x32xf32>, vector<32x4xf32>, vector<8x4xf32> -> vector<8x4xf32>
    %cst_9 = arith.constant dense<0.000000e+00> : vector<8x8xf32>
    %8 = tpu.matmul %4, %7, %cst_9 {dimension_numbers = #tpu.dot_dimension_numbers<[1], [1], [0], [0], [0, 0, 1, 0], [], []>} : vector<8x4xf32>, vector<8x4xf32>, vector<8x8xf32> -> vector<8x8xf32>
    %cst_10 = arith.constant dense<0xFF800000> : vector<8xf32>
    %9 = vector.multi_reduction <maximumf>, %8, %cst_10 [1] : vector<8x8xf32> to vector<8xf32>
    %10 = vector.shape_cast %9 : vector<8xf32> to vector<8x1xf32>
    %11 = vector.broadcast %10 : vector<8x1xf32> to vector<8x8xf32>
    %12 = arith.subf %8, %11 : vector<8x8xf32>
    %13 = math.exp %12 : vector<8x8xf32>
    %cst_11 = arith.constant dense<0.000000e+00> : vector<8xf32>
    %14 = vector.multi_reduction <add>, %13, %cst_11 [1] : vector<8x8xf32> to vector<8xf32>
    %15 = vector.shape_cast %14 : vector<8xf32> to vector<8x1xf32>
    %cst_12 = arith.constant 1.000000e+00 : f32
    %16 = vector.broadcast %cst_12 : f32 to vector<8x1xf32>
    %17 = arith.divf %16, %15 : vector<8x1xf32>
    %18 = vector.broadcast %17 : vector<8x1xf32> to vector<8x8xf32>
    %19 = arith.mulf %13, %18 : vector<8x8xf32>
    %20 = tpu.iota {dimensions = array<i32: 0>} : vector<8x1xi32>
    %21 = tpu.iota {dimensions = array<i32: 1>} : vector<1x8xi32>
    %22 = vector.broadcast %20 : vector<8x1xi32> to vector<8x8xi32>
    %23 = vector.broadcast %21 : vector<1x8xi32> to vector<8x8xi32>
    %24 = arith.cmpi eq, %22, %23 : vector<8x8xi32>
    %25 = tpu.transpose %19, [1, 0] : vector<8x8xf32> -> vector<8x8xf32>
    %26 = arith.addf %19, %25 : vector<8x8xf32>
    %cst_13 = arith.constant 1.000000e+00 : f32
    %27 = vector.broadcast %cst_13 : f32 to vector<8x8xf32>
    %28 = arith.select %24, %27, %26 : vector<8x8xi1>, vector<8x8xf32>
    %cst_14 = arith.constant dense<0.000000e+00> : vector<8xf32>
    %29 = vector.multi_reduction <add>, %28, %cst_14 [1] : vector<8x8xf32> to vector<8xf32>
    %30 = vector.shape_cast %29 : vector<8xf32> to vector<8x1xf32>
    %cst_15 = arith.constant 1.000000e-10 : f32
    %31 = vector.broadcast %cst_15 : f32 to vector<8x1xf32>
    %32 = arith.addf %30, %31 : vector<8x1xf32>
    %33 = math.rsqrt %32 : vector<8x1xf32>
    %34 = vector.broadcast %33 : vector<8x1xf32> to vector<8x8xf32>
    %35 = arith.mulf %34, %28 : vector<8x8xf32>
    %36 = tpu.transpose %33, [1, 0] : vector<8x1xf32> -> vector<1x8xf32>
    %37 = vector.broadcast %36 : vector<1x8xf32> to vector<8x8xf32>
    %38 = arith.mulf %35, %37 : vector<8x8xf32>
    %c0_16 = arith.constant 0 : index
    %c0_17 = arith.constant 0 : index
    %c0_18 = arith.constant 0 : index
    %c0_19 = arith.constant 0 : index
    %39 = vector.load %arg5[%c0_16, %c0_17, %c0_18, %c0_19] : memref<1x1x8x8xf32, #tpu.memory_space<vmem>>, vector<1x1x8x8xf32>
    %40 = vector.shape_cast %39 : vector<1x1x8x8xf32> to vector<8x8xf32>
    %41 = vector.shape_cast %38 : vector<8x8xf32> to vector<1x1x8x8xf32>
    tpu.vector_store %arg5[%c0_16, %c0_17, %c0_18, %c0_19], %41 {strides = array<i32>} : memref<1x1x8x8xf32, #tpu.memory_space<vmem>>, vector<1x1x8x8xf32>,
    return
  }
  func.func @transform_0(%arg0: i32, %arg1: i32) -> (i32, i32, i32) {
    %c0_i32 = arith.constant 0 : i32
    %c0_i32_0 = arith.constant 0 : i32
    %c0_i32_1 = arith.constant 0 : i32
    return %arg0, %c0_i32, %c0_i32_0 : i32, i32, i32
  }
  func.func @transform_1(%arg0: i32, %arg1: i32) -> (i32, i32, i32) {
    %c0_i32 = arith.constant 0 : i32
    %c0_i32_0 = arith.constant 0 : i32
    %c0_i32_1 = arith.constant 0 : i32
    return %arg1, %c0_i32, %c0_i32_0 : i32, i32, i32
  }
  func.func @transform_2(%arg0: i32, %arg1: i32) -> (i32, i32, i32) {
    %c0_i32 = arith.constant 0 : i32
    %c0_i32_0 = arith.constant 0 : i32
    %c0_i32_1 = arith.constant 0 : i32
    return %arg1, %c0_i32, %c0_i32_0 : i32, i32, i32
  }
  func.func @transform_3(%arg0: i32, %arg1: i32) -> (i32, i32, i32, i32) {
    %c0_i32 = arith.constant 0 : i32
    %c0_i32_0 = arith.constant 0 : i32
    %c0_i32_1 = arith.constant 0 : i32
    return %arg0, %arg1, %c0_i32, %c0_i32_0 : i32, i32, i32, i32
  }
}

</mosaic_0001>

<bundles_post_ra>
// kernel: tpu_custom_call.1
= control target key start
LH: loop header
LB: loop body
LE: loop exit
PB: predicated region body
PF: predicated region fallthrough
CT: control target
= control target key end

     0   :  { %8 = vsyncpa [#allocation3], 0  ;;  %s1052_s0 = inlined_call_operand.vmem [shape: f32[2,8,32], index: 0, kind: input, shape index: {}]   ;;  %s1053_s1 = inlined_call_operand.vmem [shape: f32[2,32,4], index: 1, kind: input, shape index: {}]   ;;  %s1054_s2 = inlined_call_operand.vmem [shape: f32[2,32,4], index: 2, kind: input, shape index: {}]   ;;  %s1055_s3 = inlined_call_operand.hbm [shape: f32[2,2,8,8], index: 3, kind: output, shape index: {}]  }
   0x1   :  { %10 = vsyncpa [#allocation3 + $0x1], 0  ;;  %s915_s12 = smov 0   ;;  %s917_s13 = smov 0  }
   0x2   :  { %s919_s14 = smov 0   ;;  %s921_s15 = smov 0  }
   0x3   :  { %s923_s16 = smov 0   ;;  %s925_s17 = smov 0  }
   0x4   :  { %s927_s18 = smov 0   ;;  %s929_s19 = smov 0  }
   0x5 LB: > { %s658_s20 = sadd.s32 4294967295, %s890_s19   ;;  %s659_s21 = sadd.s32 4294967294, %s890_s19   ;;  %s890_s19 = sphi %s929_s19, %s16_s19   ;;  %s886_s18 = sphi %s927_s18, %s1064_s18   ;;  %s882_s17 = sphi %s925_s17, %s1063_s17   ;;  %s878_s16 = sphi %s923_s16, %s1062_s16   ;;  %s874_s15 = sphi %s921_s15, %s1061_s15   ;;  %s870_s14 = sphi %s919_s14, %s1060_s14   ;;  %s866_s13 = sphi %s917_s13, %s1059_s13   ;;  %s862_s12 = sphi %s915_s12, %s1058_s12  }
   0x6   : > { %s25_s22 = sadd.s32 1, %s882_s17  ;;  %s28_s23 = sadd.s32 1, %s886_s18 }
   0x7   : > { %p26_p0 = scmp.ge.s32.totalorder %s25_s22, 2  ;;  %p125_p1 = scmp.ne.s32.totalorder %s870_s14, %s866_s13 }
   0x8   : > { %p126_p2 = scmp.eq.s32.totalorder %s658_s20, 3  ;;  %p131_p5 = scmp.ne.s32.totalorder %s866_s13, %s862_s12 }
   0x9   : > { %s1066_s22 = smov (%p26_p0, %s25_s22), 0  ;;  %s1068_s23 = smov (!%p26_p0, %s28_s23), %s886_s18 }
   0xa   : > { %s111_s24 = ssub.s32 %s882_s17, %s1066_s22  ;;  %p966_p3 = por %p126_p2, %p125_p1 }
   0xb   : > { %p30_p4 = scmp.ge.s32.totalorder %s1068_s23, 2  ;;  %p132_p6 = scmp.eq.s32.totalorder %s659_s21, 3 }
   0xc   : > { %p662_p7 = scmp.ge.s32.totalorder %s890_s19, 1  ;;  %p173_p9 = scmp.lt.s32.totalorder %s890_s19, 5 }
   0xd   : > { %s1070_s23 = smov (%p30_p4, %s1068_s23), 0  ;;  %p975_p8 = por %p132_p6, %p131_p5 }
   0xe   : > { %s110_s27 = ssub.s32 %s886_s18, %s1070_s23  ;;  %s115_s28 = sadd.s32 1, %s870_s14 }
   0xf   : > { %s112_s29 = sor.u32 %s111_s24, %s110_s27  ;;  %p174_p10 = pnand %p662_p7, %p173_p9 }
  0x10   : > { %p113_p11 = scmp.eq.s32.totalorder %s112_s29, 0  ;;  %p210_p12 = scmp.lt.s32.totalorder (!%p174_p10), %s874_s15, 1 }
  0x11   : > { %177 = sbr.rel (%p174_p10) target bundleno = 1160 (0x488), region = 32  ;;  %p206_p13 = scmp.lt.s32.totalorder (!%p174_p10), %s878_s16, 1 }
  0x12   : > { %s984_s30 = scalar_select %p113_p11, %s870_s14, %s115_s28  }
  0x13   : > { %s203_s29 = sand.u32 (!%p174_p10), 1, %s866_s13  }
  0x16   : > { %v892_v0 = vmov 0.0   ;;  %s211_s4 = scalar_select %p210_p12, %s874_s15, 1  ;;  %vm893_vm0 = vmmov 0   ;;  %vm225_vm1 = vcmask 261120   ;;  %vm373_vm2 = vcmask 31744  }
  0x17   : > { %703 = vmatprep.subr.mxu1 %v892_v0  ;;  %692 = vmatprep.subr.mxu0 %v892_v0  ;;  %s207_s5 = scalar_select %p206_p13, %s878_s16, 1  ;;  %vm450_vm3 = vcmask 64512   ;;  %v463_v25 = vlaneseq }
  0x18   : > { %711 = vmatprep.mubr.msk.f32.mxu1 %vm893_vm0, %v892_v0  ;;  %700 = vmatprep.mubr.msk.f32.mxu0 %vm893_vm0, %v892_v0  ;;  %s678_s6 = sshll.u32 %s211_s4, 5  ;;  %s663_s4 = sshll.u32 %s203_s29, 3 }
  0x19   : > { %s219_s9 = scalar_lea.vmem %s1054_s2, %s678_s6  ;;  %s214_s20 = scalar_lea.vmem %s1053_s1, %s678_s6  ;;  %v464_v26 = vshrl.u32 %v463_v25, 7  ;;  %v466_v27 = vand.u32 127, %v463_v25 }
  0x1a   : > { %v302_v1 = vld [vmem:[%s219_s9 + $0x18] sm:$0xff]  ;;  %v301_v3 = vld [vmem:[%s219_s9 + $0x10] sm:$0xff]  ;;  %s664_s21 = sshll.u32 %s207_s5, 3  ;;  %v300_v5 = vld [vmem:[%s219_s9 + $0x8] sm:$0xff]  ;;  %s674_s5 = sshll.u32 %s878_s16, 1 }
  0x1b   : > { %v224_v2 = vld [vmem:[%s214_s20 + $0x18] sm:$0xff]  ;;  %704 = vmatpush3.msra.mxu1 %v302_v1  ;;  %v223_v4 = vld [vmem:[%s214_s20 + $0x10] sm:$0xff]  ;;  %v222_v6 = vld [vmem:[%s214_s20 + $0x8] sm:$0xff]  ;;  %s209_s28 = scalar_lea.vmem %s1052_s0, %s664_s21  ;;  %vm467_vm4 = vcmp.eq.s32.totalorder %v464_v26, %v466_v27  ;;  %v542_v35 = vsub.s32 0, %v464_v26  ;;  %s558_s6 = sadd.s32 %s874_s15, %s674_s5 }
  0x1c   : > { %693 = vmatpush3.msra.mxu0 %v224_v2  ;;  %705 = vmatprep.subr.mxu1 %v892_v0  ;;  %v299_v7 = vld [vmem:[%s219_s9] sm:$0xff]  ;;  %s675_s7 = sshll.u32 %s558_s6, 7  ;;  %s205_s8 = scalar_lea.vmem [#allocation2], %s663_s4 }
  0x1d   : > { %694 = vmatprep.subr.mxu0 %v892_v0  ;;  %706 = vmatpush3.msra.mxu1 %v301_v3  ;;  %v221_v8 = vld [vmem:[%s214_s20] sm:$0xff]  ;;  %s562_s9 = sshll.u32 %s205_s8, 4  ;;  %s560_s20 = scalar_lea.hbm %s1055_s3, %s675_s7  ;;  %s563_s9 = int_to_ptr.vmem [resolvable:$true] %s562_s9 }
  0x1e   : > { %695 = vmatpush3.msra.mxu0 %v223_v4  ;;  %707 = vmatprep.subr.mxu1 %v892_v0  ;;  %v220_v9 = vld [vmem:[%s209_s28] sm:$0xff]  ;;  %s547_s21 = scalar_lea.sflag [#allocation3], %s203_s29  ;;  %s798_s24 = scalar_lea.vmem %s563_s9, 128 }
  0x1f   : > { %696 = vmatprep.subr.mxu0 %v892_v0  ;;  %708 = vmatpush3.msra.mxu1 %v300_v5  ;;  %p799_p0 = scmp.ne.s32.totalorder %s563_s9, %s798_s24  ;;  %s894_s15 = smov [#allocation2]  }
  0x20   : > { %697 = vmatpush3.msra.mxu0 %v222_v6  ;;  %709 = vmatprep.subr.mxu1 %v892_v0  ;;  %s802_s16 = sshll.u32 %s894_s15, 4  ;;  %s803_s16 = int_to_ptr.vmem [resolvable:$false] %s802_s16 }
  0x21   : > { %698 = vmatprep.subr.mxu0 %v892_v0  ;;  %710 = vmatpush3.msra.mxu1 %v299_v7  ;;  %p800_p1 = pnand %p799_p0, %p966_p3  ;;  %s804_s27 = scalar_lea.vmem %s803_s16, 256 }
  0x22   : > { %699 = vmatpush3.msra.mxu0 %v221_v8  ;;  %712 = vmatmul.mubr.msk.f32.vlgmr.msra.gmra.mxu1 %vm225_vm1, %v220_v9  ;;  %p805_p4 = scmp.lt.s32.totalorder %s563_s9, %s803_s16  ;;  %p806_p5 = scmp.lt.s32.totalorder %s804_s27, %s798_s24 }
  0x23   : > { %701 = vmatmul.mubr.msk.f32.vlgmr.msra.gmra.mxu0 %vm225_vm1, %v220_v9  ;;  %714 = vmatprep.subr.mxu0 %v892_v0  ;;  %p801_p2 = pneg %p800_p1 }
  0x24   : > { %716 = vmatprep.mubr.msk.f32.mxu0 %vm893_vm0, %v892_v0  ;;  %p807_p6 = por %p806_p5, %p805_p4 }
  0x26   : > { %p808_p7 = pnand %p807_p6, %p801_p2 }
  0xe2   : > { %v369_v10 = vpop.f32.mrf.mxu1 }
  0xe3   : > { %v295_v11 = vpop.f32.mrf.mxu0  ;;  %715 = vmatpush3.xpose.msk.msra.mxu0 %vm373_vm2, %v369_v10 }
  0xe4   : > { %v713_v12 = vpop.f32.mrf.mxu1 }
  0xe5   : > { %v702_v13 = vpop.f32.mrf.mxu0 }
  0xe6   : > { %717 = vmatmul.mubr.msk.f32.vlgmr.msra.gmra.mxu0 %vm373_vm2, %v295_v11 }
 0x1a6   : > { %v446_v14 = vpop.f32.mrf.mxu0 }
 0x1a7   : > { %v451_v15 = vsel %vm450_vm3, %v446_v14, -inf }
 0x1a8   : > { %452 = vmax.xlane.f32.xlu0 %v451_v15  ;;  %v718_v16 = vpop.f32.mrf.mxu0 }
 0x231   : > { %v453_v17 = vpop.xlane.xlu0 %452 }
 0x232   : > { %v454_v18 = vsub.f32 %v446_v14, %v453_v17 }
 0x234   : > { %v455_v19 = vmul.f32 1.442695, %v454_v18 }
 0x236   : > { %792 = vpow2.f32 %v455_v19 }
 0x243   : > { %v793_v20 = vpop.eup %792 }
 0x244   : > { %v457_v21 = vsel %vm450_vm3, %v793_v20, 0.0 }
 0x245   : > { %458 = vadd.xlane.f32.xlu0 %v457_v21 }
 0x2ce   : > { %v459_v22 = vpop.xlane.xlu0 %458 }
 0x2cf   : > { %794 = vrcp.f32 %v459_v22 }
 0x2dc   : > { %v795_v23 = vpop.eup %794 }
 0x2dd   : > { %v462_v24 = vmul.f32 %v795_v23, %v793_v20 }
 0x2df   : > { %468 = vxpose.xlu1.b32.start.end [1/1] (short) (narrow) %v462_v24, 8 }
 0x35b   : > { %v484_v28 = vpop.trf.xlu1 }
 0x35c   : > { %v500_v29 = vadd.f32 %v484_v28, %v462_v24 }
 0x35e   : > { %v501_v30 = vsel %vm467_vm4, 1.0, %v500_v29 }
 0x35f   : > { %v502_v31 = vsel %vm450_vm3, %v501_v30, 0.0 }
 0x360   : > { %503 = vadd.xlane.f32.xlu1 %v502_v31 }
 0x3e9   : > { %v504_v32 = vpop.xlane.xlu1 %503 }
 0x3ea   : > { %v505_v33 = vadd.f32 1e-10, %v504_v32 }
 0x3ec   : > { %796 = vrsqrt.f32 %v505_v33 }
 0x3f9   : > { %v797_v34 = vpop.eup %796 }
 0x3fa   : > { %508 = vxpose.xlu0.b32.start.end [1/1] (short) (narrow) %v797_v34, 8  ;;  %v507_v37 = vmul.f32 %v797_v34, %v501_v30 }
 0x476   : > { %v524_v36 = vpop.trf.xlu0 }
 0x477   : > { %v543_v38 = vrot.slane %v524_v36, %v542_v35 }
 0x479   : > { %v544_v39 = vmul.f32 %v543_v38, %v507_v37 }
 0x47b   : > { %545 = vst.msk [vmem:[%s205_s8] sm:$0xff] %vm450_vm3, %v544_v39 }
 0x47c   : > { %811 = shalt.err (!%p808_p7)
}
 0x47d   : > { %s812_s28 = scalar_lea.hbm %s560_s20, 128  ;;  %s816_s5 = scalar_lea.hbm %s1055_s3, 512 }
 0x47e   : > { %p813_p9 = scmp.ne.s32.totalorder %s560_s20, %s812_s28  ;;  %p817_p12 = scmp.lt.s32.totalorder %s560_s20, %s1055_s3 }
 0x47f   : > { %p818_p13 = scmp.lt.s32.totalorder %s816_s5, %s812_s28 }
 0x480   : > { %p814_p10 = pnand %p813_p9, %p966_p3 }
 0x481   : > { %p819_p0 = por %p818_p13, %p817_p12 }
 0x482   : > { %p815_p11 = pneg %p814_p10 }
 0x484   : > { %p820_p1 = pnand %p819_p0, %p815_p11 }
 0x486   : > { %823 = shalt.err (!%p820_p1)
}
 0x487   : > { %719 = dma.vmem_to_hbm [thread:$0]  (%p966_p3), %s563_s9, 128, %s560_s20, %s547_s21  }
 0x488 PF: > { %p725_p2 = scmp.ge.s32.totalorder %s890_s19, 2  ;;  %s574_s8 = sand.u32 1, %s862_s12  }
 0x489   : > { %s575_s10 = scalar_lea.sflag [#allocation3], %s574_s8 }
 0x48a   : > { %p722_p4 = pnand %p725_p2, %p975_p8 }
 0x48c   : > { %p723_p5 = pneg %p722_p4 }
 0x48e   : > { %857 = dma.done.wait (%p723_p5), %s575_s10, 128  }
 0x48f   : > { %859 = vsyncadd (%p723_p5), %s575_s10, 4294967168  ;;  %s16_s19 = sadd.s32 1, %s890_s19   ;;  %s1058_s12 = smov %s866_s13 }
 0x490   : > { %p13_p6 = scmp.ge.s32.totalorder %s16_s19, 6   ;;  %s1059_s13 = smov %s870_s14 }
 0x491   : > { %s1060_s14 = smov %s984_s30  ;;  %s1061_s15 = smov %s882_s17 }
 0x492   : > { %s1062_s16 = smov %s886_s18  ;;  %s1063_s17 = smov %s1066_s22 }
 0x493   : > { %s1064_s18 = smov %s1070_s23  ;;  %15 = sbr.rel (!%p13_p6) target bundleno = 5 (0x5), region = 73 }
 0x498   :  { %580 = vsyncpa [#allocation3], 1 }
 0x499   :  { %582 = vsyncpa [#allocation3 + $0x1], 1 }

</bundles_post_ra>
